<compile_context>
chip_gen: v7x
topology: tpu7x:2x2x1
jax: 0.10.0
libtpu: 0.0.40
codegen_flags: <defaults>
</compile_context>

<pallas_src>
import jax
import jax.numpy as jnp
import numpy as np
from jax.experimental import pallas as pl
from jax.experimental.pallas import tpu as pltpu

KSIZE = 4                   # ConvTranspose2d kernel size
STRIDE = 2
EPS = 1e-5                  # InstanceNorm2d default (affine=False assumed)
NPHASE = STRIDE * STRIDE    # 4 output phases (oh%2, ow%2)
NWIN = 3 * 3                # shared 3x3 window-offset set (dh, dw in {0,1,2})


def _phase_weights(w_pt, cp):
    """(Cin, Cout, 4, 4) ConvTranspose2d weight -> (4*Cout, 9*cp) fused phase matrix.

    Row m = q*Cout + c (q = ph*2 + pw) holds, for output phase (ph, pw) and
    channel c, the taps along contraction index k = (dh*3 + dw)*cp + ic.
    Window offset (dh, dw) reads x[i+dh-1, j+dw-1]; offsets inactive for a
    phase and padded input channels ic in [Cin, cp) get zero weight.
    """
    Cin, Cout, K, _ = w_pt.shape
    # ConvTranspose relation: oh = 2*ih - 1 + kh with ih = i + dh - 1
    #   => kh = ph + (K-1) - 2*dh, valid iff 0 <= kh < K. Same for width.
    k_idx = np.array([[ph + (K - 1) - STRIDE * d for d in range(3)]
                      for ph in range(STRIDE)])                    # (2, 3)
    valid = ((k_idx >= 0) & (k_idx < K)).astype(np.float32)
    k_safe = np.clip(k_idx, 0, K - 1)

    w = jnp.asarray(w_pt, jnp.float32)
    # gather taps -> (ic, c, ph, dh, pw, dw)
    wsel = w[:, :, k_safe, :][:, :, :, :, k_safe]
    vmask = valid[:, :, None, None] * valid[None, None, :, :]      # (ph, dh, pw, dw)
    wsel = wsel * jnp.asarray(vmask)[None, None]
    # -> (ph, pw, c, dh, dw, ic), zero-pad ic -> cp, then fuse phases into rows.
    wq = jnp.transpose(wsel, (2, 4, 1, 3, 5, 0))                   # (2,2,Cout,3,3,Cin)
    wq = jnp.pad(wq, ((0, 0),) * 5 + ((0, cp - Cin),))
    return wq.reshape(NPHASE * Cout, NWIN * cp)


def _make_kernel(Cin, Cp, Cout, H, W, S):
    w_pow2 = (W & (W - 1)) == 0

    def kernel(x_ref, w_ref, o_ref, patch_ref):
        # x_ref    : (Cin, S)              one batch element, flat spatial (lane-dense)
        # w_ref    : (4*Cout, 9*Cp)        fused per-phase weights
        # o_ref    : (4*Cout, S)           phase-major output (single lane-dense store)
        # patch_ref: (9*Cp, S)             sublane-aligned im2col patch (scratch)
        x = x_ref[...]                                             # (Cin, S)

        # Hoisted boundary predicates (conv's implicit zero padding + roll wrap).
        idx = jax.lax.broadcasted_iota(jnp.int32, (1, S), 1)       # flat position
        if w_pow2:
            col = idx & (W - 1)
        else:
            col = jax.lax.rem(idx, W)      # only traced when W is not a power of two
        row_masks = [idx >= W, None, idx < (S - W)]                # row>=1 / row<=H-2
        col_masks = [col >= 1, None, col <= (W - 2)]               # col>=1 / col<=W-2

        if Cp > Cin:
            pad_zeros = jnp.zeros((Cp - Cin, S), jnp.float32)

        # --- im2col: 9 rolled windows of the in-register input, boundary-masked ---
        for dh in range(3):
            for dw in range(3):
                t = dh * 3 + dw
                delta = (dh - 1) * W + (dw - 1)                    # win[j] = x[j + delta]
                shift = (-delta) % S
                win = pltpu.roll(x, shift, axis=1) if shift else x
                m = row_masks[dh]
                if col_masks[dw] is not None:
                    m = col_masks[dw] if m is None else (m & col_masks[dw])
                if m is not None:
                    win = jnp.where(m, win, 0.0)                   # zeros padding + wrap
                patch_ref[t * Cp:t * Cp + Cin, :] = win
                if Cp > Cin:
                    patch_ref[t * Cp + Cin:(t + 1) * Cp, :] = pad_zeros

        # --- single fused matmul: all 4 phases, contraction K = 9*Cp ---
        y = jnp.dot(w_ref[...], patch_ref[...],
                    preferred_element_type=jnp.float32)            # (4*Cout, S)

        # --- InstanceNorm over the full output plane (all 4 phases) + ReLU ---
        # Single-pass moments: 2 lane reductions total (sum and sum of squares).
        yq = [y[q * Cout:(q + 1) * Cout, :] for q in range(NPHASE)]
        s1 = yq[0] + yq[1] + yq[2] + yq[3]                         # (Cout, S)
        s2 = yq[0] * yq[0] + yq[1] * yq[1] + yq[2] * yq[2] + yq[3] * yq[3]
        inv_n = 1.0 / (NPHASE * S)
        mean = jnp.sum(s1, axis=-1, keepdims=True) * inv_n         # (Cout, 1)
        ex2 = jnp.sum(s2, axis=-1, keepdims=True) * inv_n
        var = jnp.maximum(ex2 - mean * mean, 0.0)
        inv_std = jax.lax.rsqrt(var + EPS)
        mean_r = jnp.concatenate([mean] * NPHASE, axis=0)          # (4*Cout, 1)
        inv_r = jnp.concatenate([inv_std] * NPHASE, axis=0)
        o_ref[...] = jnp.maximum((y - mean_r) * inv_r, 0.0)        # one lane-dense store

    return kernel


def decoder_block(x_nchw, w_pt):
    """x_nchw: (N, Cin, H, W) float32.  w_pt: (Cin, Cout, 4, 4) (PyTorch layout)."""
    N, Cin, H, W = x_nchw.shape
    Cout = w_pt.shape[1]
    S = H * W
    Cp = -(-Cin // 8) * 8                      # sublane-aligned channel pad

    x_flat = x_nchw.reshape(N, Cin, S).astype(jnp.float32)   # free metadata reshape
    wq = _phase_weights(w_pt, Cp)                             # (4*Cout, 9*Cp)

    kernel = _make_kernel(Cin, Cp, Cout, H, W, S)

    y = pl.pallas_call(
        kernel,
        out_shape=jax.ShapeDtypeStruct((N, NPHASE * Cout, S), jnp.float32),
        grid_spec=pltpu.PrefetchScalarGridSpec(
            num_scalar_prefetch=0,
            grid=(N,),
            in_specs=[
                pl.BlockSpec((None, Cin, S), lambda n: (n, 0, 0)),
                pl.BlockSpec((NPHASE * Cout, NWIN * Cp), lambda n: (0, 0)),
            ],
            out_specs=pl.BlockSpec((None, NPHASE * Cout, S), lambda n: (n, 0, 0)),
            scratch_shapes=[pltpu.VMEM((NWIN * Cp, S), jnp.float32)],
        ),
        compiler_params=pltpu.CompilerParams(
            dimension_semantics=("parallel",),
            vmem_limit_bytes=64 * 1024 * 1024),
    )(x_flat, wq)

    # Interleave the 4 phases back to NCHW: (n, ph, pw, c, i, j) -> (n, c, 2i+ph, 2j+pw).
    # (Drop this transpose if the consumer can take the phase-major layout directly.)
    y = y.reshape(N, STRIDE, STRIDE, Cout, H, W)
    y = jnp.transpose(y, (0, 3, 4, 1, 5, 2))                  # (N, Cout, H, 2, W, 2)
    # TODO(synk): Dropout2d(p=0.5) is stochastic and train-mode only (identity in
    # eval / has_dropout=False); not applied here.
    return y.reshape(N, Cout, STRIDE * H, STRIDE * W)


def reference_decoder_block(x_nchw, w_pt):
    """Pure-JAX reference: transposed conv via lhs-dilated conv + instance norm + relu."""
    w_conv = jnp.transpose(w_pt[:, :, ::-1, ::-1], (1, 0, 2, 3))  # (Cout, Cin, 4, 4)
    y = jax.lax.conv_general_dilated(
        x_nchw, w_conv,
        window_strides=(1, 1),
        padding=[(2, 2), (2, 2)],
        lhs_dilation=(2, 2),
        dimension_numbers=("NCHW", "OIHW", "NCHW"),
        precision=jax.lax.Precision.HIGHEST)
    mean = jnp.mean(y, axis=(2, 3), keepdims=True)
    var = jnp.mean((y - mean) ** 2, axis=(2, 3), keepdims=True)
    y = (y - mean) * jax.lax.rsqrt(var + EPS)
    return jnp.maximum(y, 0.0)


if __name__ == "__main__":
    key = jax.random.PRNGKey(0)
    kx, kw = jax.random.split(key)

    N, Cin, H, W = 2, 4, 16, 16
    Cout = 8

    x = jax.random.normal(kx, (N, Cin, H, W), dtype=jnp.float32)
    # Deterministic synthetic ConvTranspose2d weight, PyTorch layout (Cin, Cout, 4, 4).
    w_pt = 0.1 * jax.random.normal(kw, (Cin, Cout, KSIZE, KSIZE), dtype=jnp.float32)

    decoder_fn = jax.jit(decoder_block)
    out = jax.block_until_ready(decoder_fn(x, w_pt))

    ref = jax.block_until_ready(reference_decoder_block(x, w_pt))
    np.testing.assert_allclose(np.asarray(out), np.asarray(ref), rtol=2e-4, atol=2e-4)
    assert out.shape == (N, Cout, 2 * H, 2 * W)

    print("KERNEL_OK")
</pallas_src>

<mosaic_0001>
module attributes {stable_mosaic.version = 11 : i64} {
  func.func @kernel(%arg0: i32, %arg1: memref<1x4x256xf32, #tpu.memory_space<vmem>>, %arg2: memref<32x72xf32, #tpu.memory_space<vmem>>, %arg3: memref<1x32x256xf32, #tpu.memory_space<vmem>>, %arg4: memref<72x256xf32, #tpu.memory_space<vmem>>) attributes {dimension_semantics = [#tpu.dimension_semantics<parallel>], iteration_bounds = array<i64: 2>, scalar_prefetch = 0 : i64, scratch_operands = 1 : i64, tpu.core_type = #tpu.core_type<tc>, window_params = [{transform_indices = @transform_0, window_bounds = array<i64: 1, 4, 256>}, {pipeline_mode = #tpu.pipeline_mode<synchronous>, transform_indices = @transform_1, window_bounds = array<i64: 32, 72>}, {transform_indices = @transform_2, window_bounds = array<i64: 1, 32, 256>}]} {
    %c0 = arith.constant 0 : index
    %c0_0 = arith.constant 0 : index
    %c0_1 = arith.constant 0 : index
    %0 = vector.load %arg1[%c0, %c0_0, %c0_1] : memref<1x4x256xf32, #tpu.memory_space<vmem>>, vector<1x4x256xf32>
    %1 = vector.shape_cast %0 : vector<1x4x256xf32> to vector<4x256xf32>
    %2 = tpu.iota {dimensions = array<i32: 1>} : vector<1x256xi32>
    %c15_i32 = arith.constant 15 : i32
    %3 = vector.broadcast %c15_i32 : i32 to vector<1x256xi32>
    %4 = arith.andi %2, %3 : vector<1x256xi32>
    %c16_i32 = arith.constant 16 : i32
    %5 = vector.broadcast %c16_i32 : i32 to vector<1x256xi32>
    %6 = arith.cmpi sge, %2, %5 : vector<1x256xi32>
    %c240_i32 = arith.constant 240 : i32
    %7 = vector.broadcast %c240_i32 : i32 to vector<1x256xi32>
    %8 = arith.cmpi slt, %2, %7 : vector<1x256xi32>
    %c1_i32 = arith.constant 1 : i32
    %9 = vector.broadcast %c1_i32 : i32 to vector<1x256xi32>
    %10 = arith.cmpi sge, %4, %9 : vector<1x256xi32>
    %c14_i32 = arith.constant 14 : i32
    %11 = vector.broadcast %c14_i32 : i32 to vector<1x256xi32>
    %12 = arith.cmpi sle, %4, %11 : vector<1x256xi32>
    %cst = arith.constant 0.000000e+00 : f32
    %13 = vector.broadcast %cst : f32 to vector<4x256xf32>
    %c17_i32 = arith.constant 17 : i32
    %14 = tpu.dynamic_rotate %1 by %c17_i32 dim 1 : vector<4x256xf32>, i32 -> vector<4x256xf32>
    %15 = arith.andi %6, %10 : vector<1x256xi1>
    %cst_2 = arith.constant 0.000000e+00 : f32
    %16 = vector.shape_cast %15 : vector<1x256xi1> to vector<1x256xi1>
    %17 = vector.broadcast %16 : vector<1x256xi1> to vector<4x256xi1>
    %18 = vector.broadcast %cst_2 : f32 to vector<4x256xf32>
    %19 = arith.select %17, %14, %18 : vector<4x256xi1>, vector<4x256xf32>
    %c0_3 = arith.constant 0 : index
    %c0_4 = arith.constant 0 : index
    %20 = vector.load %arg4[%c0_3, %c0_4] : memref<72x256xf32, #tpu.memory_space<vmem>>, vector<4x256xf32>
    tpu.vector_store %arg4[%c0_3, %c0_4], %19 {strides = array<i32>} : memref<72x256xf32, #tpu.memory_space<vmem>>, vector<4x256xf32>,
    %c4 = arith.constant 4 : index
    %c0_5 = arith.constant 0 : index
    %21 = vector.load %arg4[%c4, %c0_5] : memref<72x256xf32, #tpu.memory_space<vmem>>, vector<4x256xf32>
    tpu.vector_store %arg4[%c4, %c0_5], %13 {strides = array<i32>} : memref<72x256xf32, #tpu.memory_space<vmem>>, vector<4x256xf32>,
    %c16_i32_6 = arith.constant 16 : i32
    %22 = tpu.dynamic_rotate %1 by %c16_i32_6 dim 1 : vector<4x256xf32>, i32 -> vector<4x256xf32>
    %cst_7 = arith.constant 0.000000e+00 : f32
    %23 = vector.shape_cast %6 : vector<1x256xi1> to vector<1x256xi1>
    %24 = vector.broadcast %23 : vector<1x256xi1> to vector<4x256xi1>
    %25 = vector.broadcast %cst_7 : f32 to vector<4x256xf32>
    %26 = arith.select %24, %22, %25 : vector<4x256xi1>, vector<4x256xf32>
    %c8 = arith.constant 8 : index
    %c0_8 = arith.constant 0 : index
    %27 = vector.load %arg4[%c8, %c0_8] : memref<72x256xf32, #tpu.memory_space<vmem>>, vector<4x256xf32>
    tpu.vector_store %arg4[%c8, %c0_8], %26 {strides = array<i32>} : memref<72x256xf32, #tpu.memory_space<vmem>>, vector<4x256xf32>,
    %c12 = arith.constant 12 : index
    %c0_9 = arith.constant 0 : index
    %28 = vector.load %arg4[%c12, %c0_9] : memref<72x256xf32, #tpu.memory_space<vmem>>, vector<4x256xf32>
    tpu.vector_store %arg4[%c12, %c0_9], %13 {strides = array<i32>} : memref<72x256xf32, #tpu.memory_space<vmem>>, vector<4x256xf32>,
    %c15_i32_10 = arith.constant 15 : i32
    %29 = tpu.dynamic_rotate %1 by %c15_i32_10 dim 1 : vector<4x256xf32>, i32 -> vector<4x256xf32>
    %30 = arith.andi %6, %12 : vector<1x256xi1>
    %cst_11 = arith.constant 0.000000e+00 : f32
    %31 = vector.shape_cast %30 : vector<1x256xi1> to vector<1x256xi1>
    %32 = vector.broadcast %31 : vector<1x256xi1> to vector<4x256xi1>
    %33 = vector.broadcast %cst_11 : f32 to vector<4x256xf32>
    %34 = arith.select %32, %29, %33 : vector<4x256xi1>, vector<4x256xf32>
    %c16 = arith.constant 16 : index
    %c0_12 = arith.constant 0 : index
    %35 = vector.load %arg4[%c16, %c0_12] : memref<72x256xf32, #tpu.memory_space<vmem>>, vector<4x256xf32>
    tpu.vector_store %arg4[%c16, %c0_12], %34 {strides = array<i32>} : memref<72x256xf32, #tpu.memory_space<vmem>>, vector<4x256xf32>,
    %c20 = arith.constant 20 : index
    %c0_13 = arith.constant 0 : index
    %36 = vector.load %arg4[%c20, %c0_13] : memref<72x256xf32, #tpu.memory_space<vmem>>, vector<4x256xf32>
    tpu.vector_store %arg4[%c20, %c0_13], %13 {strides = array<i32>} : memref<72x256xf32, #tpu.memory_space<vmem>>, vector<4x256xf32>,
    %c1_i32_14 = arith.constant 1 : i32
    %37 = tpu.dynamic_rotate %1 by %c1_i32_14 dim 1 : vector<4x256xf32>, i32 -> vector<4x256xf32>
    %cst_15 = arith.constant 0.000000e+00 : f32
    %38 = vector.shape_cast %10 : vector<1x256xi1> to vector<1x256xi1>
    %39 = vector.broadcast %38 : vector<1x256xi1> to vector<4x256xi1>
    %40 = vector.broadcast %cst_15 : f32 to vector<4x256xf32>
    %41 = arith.select %39, %37, %40 : vector<4x256xi1>, vector<4x256xf32>
    %c24 = arith.constant 24 : index
    %c0_16 = arith.constant 0 : index
    %42 = vector.load %arg4[%c24, %c0_16] : memref<72x256xf32, #tpu.memory_space<vmem>>, vector<4x256xf32>
    tpu.vector_store %arg4[%c24, %c0_16], %41 {strides = array<i32>} : memref<72x256xf32, #tpu.memory_space<vmem>>, vector<4x256xf32>,
    %c28 = arith.constant 28 : index
    %c0_17 = arith.constant 0 : index
    %43 = vector.load %arg4[%c28, %c0_17] : memref<72x256xf32, #tpu.memory_space<vmem>>, vector<4x256xf32>
    tpu.vector_store %arg4[%c28, %c0_17], %13 {strides = array<i32>} : memref<72x256xf32, #tpu.memory_space<vmem>>, vector<4x256xf32>,
    %c32 = arith.constant 32 : index
    %c0_18 = arith.constant 0 : index
    %44 = vector.load %arg4[%c32, %c0_18] : memref<72x256xf32, #tpu.memory_space<vmem>>, vector<4x256xf32>
    tpu.vector_store %arg4[%c32, %c0_18], %1 {strides = array<i32>} : memref<72x256xf32, #tpu.memory_space<vmem>>, vector<4x256xf32>,
    %c36 = arith.constant 36 : index
    %c0_19 = arith.constant 0 : index
    %45 = vector.load %arg4[%c36, %c0_19] : memref<72x256xf32, #tpu.memory_space<vmem>>, vector<4x256xf32>
    tpu.vector_store %arg4[%c36, %c0_19], %13 {strides = array<i32>} : memref<72x256xf32, #tpu.memory_space<vmem>>, vector<4x256xf32>,
    %c255_i32 = arith.constant 255 : i32
    %46 = tpu.dynamic_rotate %1 by %c255_i32 dim 1 : vector<4x256xf32>, i32 -> vector<4x256xf32>
    %cst_20 = arith.constant 0.000000e+00 : f32
    %47 = vector.shape_cast %12 : vector<1x256xi1> to vector<1x256xi1>
    %48 = vector.broadcast %47 : vector<1x256xi1> to vector<4x256xi1>
    %49 = vector.broadcast %cst_20 : f32 to vector<4x256xf32>
    %50 = arith.select %48, %46, %49 : vector<4x256xi1>, vector<4x256xf32>
    %c40 = arith.constant 40 : index
    %c0_21 = arith.constant 0 : index
    %51 = vector.load %arg4[%c40, %c0_21] : memref<72x256xf32, #tpu.memory_space<vmem>>, vector<4x256xf32>
    tpu.vector_store %arg4[%c40, %c0_21], %50 {strides = array<i32>} : memref<72x256xf32, #tpu.memory_space<vmem>>, vector<4x256xf32>,
    %c44 = arith.constant 44 : index
    %c0_22 = arith.constant 0 : index
    %52 = vector.load %arg4[%c44, %c0_22] : memref<72x256xf32, #tpu.memory_space<vmem>>, vector<4x256xf32>
    tpu.vector_store %arg4[%c44, %c0_22], %13 {strides = array<i32>} : memref<72x256xf32, #tpu.memory_space<vmem>>, vector<4x256xf32>,
    %c241_i32 = arith.constant 241 : i32
    %53 = tpu.dynamic_rotate %1 by %c241_i32 dim 1 : vector<4x256xf32>, i32 -> vector<4x256xf32>
    %54 = arith.andi %8, %10 : vector<1x256xi1>
    %cst_23 = arith.constant 0.000000e+00 : f32
    %55 = vector.shape_cast %54 : vector<1x256xi1> to vector<1x256xi1>
    %56 = vector.broadcast %55 : vector<1x256xi1> to vector<4x256xi1>
    %57 = vector.broadcast %cst_23 : f32 to vector<4x256xf32>
    %58 = arith.select %56, %53, %57 : vector<4x256xi1>, vector<4x256xf32>
    %c48 = arith.constant 48 : index
    %c0_24 = arith.constant 0 : index
    %59 = vector.load %arg4[%c48, %c0_24] : memref<72x256xf32, #tpu.memory_space<vmem>>, vector<4x256xf32>
    tpu.vector_store %arg4[%c48, %c0_24], %58 {strides = array<i32>} : memref<72x256xf32, #tpu.memory_space<vmem>>, vector<4x256xf32>,
    %c52 = arith.constant 52 : index
    %c0_25 = arith.constant 0 : index
    %60 = vector.load %arg4[%c52, %c0_25] : memref<72x256xf32, #tpu.memory_space<vmem>>, vector<4x256xf32>
    tpu.vector_store %arg4[%c52, %c0_25], %13 {strides = array<i32>} : memref<72x256xf32, #tpu.memory_space<vmem>>, vector<4x256xf32>,
    %c240_i32_26 = arith.constant 240 : i32
    %61 = tpu.dynamic_rotate %1 by %c240_i32_26 dim 1 : vector<4x256xf32>, i32 -> vector<4x256xf32>
    %cst_27 = arith.constant 0.000000e+00 : f32
    %62 = vector.shape_cast %8 : vector<1x256xi1> to vector<1x256xi1>
    %63 = vector.broadcast %62 : vector<1x256xi1> to vector<4x256xi1>
    %64 = vector.broadcast %cst_27 : f32 to vector<4x256xf32>
    %65 = arith.select %63, %61, %64 : vector<4x256xi1>, vector<4x256xf32>
    %c56 = arith.constant 56 : index
    %c0_28 = arith.constant 0 : index
    %66 = vector.load %arg4[%c56, %c0_28] : memref<72x256xf32, #tpu.memory_space<vmem>>, vector<4x256xf32>
    tpu.vector_store %arg4[%c56, %c0_28], %65 {strides = array<i32>} : memref<72x256xf32, #tpu.memory_space<vmem>>, vector<4x256xf32>,
    %c60 = arith.constant 60 : index
    %c0_29 = arith.constant 0 : index
    %67 = vector.load %arg4[%c60, %c0_29] : memref<72x256xf32, #tpu.memory_space<vmem>>, vector<4x256xf32>
    tpu.vector_store %arg4[%c60, %c0_29], %13 {strides = array<i32>} : memref<72x256xf32, #tpu.memory_space<vmem>>, vector<4x256xf32>,
    %c239_i32 = arith.constant 239 : i32
    %68 = tpu.dynamic_rotate %1 by %c239_i32 dim 1 : vector<4x256xf32>, i32 -> vector<4x256xf32>
    %69 = arith.andi %8, %12 : vector<1x256xi1>
    %cst_30 = arith.constant 0.000000e+00 : f32
    %70 = vector.shape_cast %69 : vector<1x256xi1> to vector<1x256xi1>
    %71 = vector.broadcast %70 : vector<1x256xi1> to vector<4x256xi1>
    %72 = vector.broadcast %cst_30 : f32 to vector<4x256xf32>
    %73 = arith.select %71, %68, %72 : vector<4x256xi1>, vector<4x256xf32>
    %c64 = arith.constant 64 : index
    %c0_31 = arith.constant 0 : index
    %74 = vector.load %arg4[%c64, %c0_31] : memref<72x256xf32, #tpu.memory_space<vmem>>, vector<4x256xf32>
    tpu.vector_store %arg4[%c64, %c0_31], %73 {strides = array<i32>} : memref<72x256xf32, #tpu.memory_space<vmem>>, vector<4x256xf32>,
    %c68 = arith.constant 68 : index
    %c0_32 = arith.constant 0 : index
    %75 = vector.load %arg4[%c68, %c0_32] : memref<72x256xf32, #tpu.memory_space<vmem>>, vector<4x256xf32>
    tpu.vector_store %arg4[%c68, %c0_32], %13 {strides = array<i32>} : memref<72x256xf32, #tpu.memory_space<vmem>>, vector<4x256xf32>,
    %c0_33 = arith.constant 0 : index
    %c0_34 = arith.constant 0 : index
    %76 = vector.load %arg2[%c0_33, %c0_34] : memref<32x72xf32, #tpu.memory_space<vmem>>, vector<32x72xf32>
    %c0_35 = arith.constant 0 : index
    %c0_36 = arith.constant 0 : index
    %77 = vector.load %arg4[%c0_35, %c0_36] : memref<72x256xf32, #tpu.memory_space<vmem>>, vector<72x256xf32>
    %cst_37 = arith.constant dense<0.000000e+00> : vector<32x256xf32>
    %78 = tpu.matmul %76, %77, %cst_37 {dimension_numbers = #tpu.dot_dimension_numbers<[1], [0], [0], [1], [0, 0, 1, 1], [], []>} : vector<32x72xf32>, vector<72x256xf32>, vector<32x256xf32> -> vector<32x256xf32>
    %79 = vector.extract_strided_slice %78 {offsets = [0, 0], sizes = [8, 256], strides = [1, 1]} : vector<32x256xf32> to vector<8x256xf32>
    %80 = vector.extract_strided_slice %78 {offsets = [8, 0], sizes = [8, 256], strides = [1, 1]} : vector<32x256xf32> to vector<8x256xf32>
    %81 = vector.extract_strided_slice %78 {offsets = [16, 0], sizes = [8, 256], strides = [1, 1]} : vector<32x256xf32> to vector<8x256xf32>
    %82 = vector.extract_strided_slice %78 {offsets = [24, 0], sizes = [8, 256], strides = [1, 1]} : vector<32x256xf32> to vector<8x256xf32>
    %83 = arith.addf %79, %80 : vector<8x256xf32>
    %84 = arith.addf %83, %81 : vector<8x256xf32>
    %85 = arith.addf %84, %82 : vector<8x256xf32>
    %86 = arith.mulf %79, %79 : vector<8x256xf32>
    %87 = arith.mulf %80, %80 : vector<8x256xf32>
    %88 = arith.addf %86, %87 : vector<8x256xf32>
    %89 = arith.mulf %81, %81 : vector<8x256xf32>
    %90 = arith.addf %88, %89 : vector<8x256xf32>
    %91 = arith.mulf %82, %82 : vector<8x256xf32>
    %92 = arith.addf %90, %91 : vector<8x256xf32>
    %cst_38 = arith.constant dense<0.000000e+00> : vector<8xf32>
    %93 = vector.multi_reduction <add>, %85, %cst_38 [1] : vector<8x256xf32> to vector<8xf32>
    %94 = vector.shape_cast %93 : vector<8xf32> to vector<8x1xf32>
    %cst_39 = arith.constant 9.765625E-4 : f32
    %95 = vector.broadcast %cst_39 : f32 to vector<8x1xf32>
    %96 = arith.mulf %94, %95 : vector<8x1xf32>
    %cst_40 = arith.constant dense<0.000000e+00> : vector<8xf32>
    %97 = vector.multi_reduction <add>, %92, %cst_40 [1] : vector<8x256xf32> to vector<8xf32>
    %98 = vector.shape_cast %97 : vector<8xf32> to vector<8x1xf32>
    %cst_41 = arith.constant 9.765625E-4 : f32
    %99 = vector.broadcast %cst_41 : f32 to vector<8x1xf32>
    %100 = arith.mulf %98, %99 : vector<8x1xf32>
    %101 = arith.mulf %96, %96 : vector<8x1xf32>
    %102 = arith.subf %100, %101 : vector<8x1xf32>
    %cst_42 = arith.constant 0.000000e+00 : f32
    %103 = vector.broadcast %cst_42 : f32 to vector<8x1xf32>
    %104 = arith.maximumf %102, %103 : vector<8x1xf32>
    %cst_43 = arith.constant 9.99999974E-6 : f32
    %105 = vector.broadcast %cst_43 : f32 to vector<8x1xf32>
    %106 = arith.addf %104, %105 : vector<8x1xf32>
    %107 = math.rsqrt %106 : vector<8x1xf32>
    %108 = tpu.concatenate %96, %96, %96, %96 in 0 : vector<8x1xf32>, vector<8x1xf32>, vector<8x1xf32>, vector<8x1xf32> -> vector<32x1xf32>
    %109 = tpu.concatenate %107, %107, %107, %107 in 0 : vector<8x1xf32>, vector<8x1xf32>, vector<8x1xf32>, vector<8x1xf32> -> vector<32x1xf32>
    %110 = vector.broadcast %108 : vector<32x1xf32> to vector<32x256xf32>
    %111 = arith.subf %78, %110 : vector<32x256xf32>
    %112 = vector.broadcast %109 : vector<32x1xf32> to vector<32x256xf32>
    %113 = arith.mulf %111, %112 : vector<32x256xf32>
    %cst_44 = arith.constant 0.000000e+00 : f32
    %114 = vector.broadcast %cst_44 : f32 to vector<32x256xf32>
    %115 = arith.maximumf %113, %114 : vector<32x256xf32>
    %c0_45 = arith.constant 0 : index
    %c0_46 = arith.constant 0 : index
    %c0_47 = arith.constant 0 : index
    %116 = vector.load %arg3[%c0_45, %c0_46, %c0_47] : memref<1x32x256xf32, #tpu.memory_space<vmem>>, vector<1x32x256xf32>
    %117 = vector.shape_cast %116 : vector<1x32x256xf32> to vector<32x256xf32>
    %118 = vector.shape_cast %115 : vector<32x256xf32> to vector<1x32x256xf32>
    tpu.vector_store %arg3[%c0_45, %c0_46, %c0_47], %118 {strides = array<i32>} : memref<1x32x256xf32, #tpu.memory_space<vmem>>, vector<1x32x256xf32>,
    return
  }
  func.func @transform_0(%arg0: i32) -> (i32, i32, i32) {
    %c0_i32 = arith.constant 0 : i32
    %c0_i32_0 = arith.constant 0 : i32
    %c0_i32_1 = arith.constant 0 : i32
    return %arg0, %c0_i32, %c0_i32_0 : i32, i32, i32
  }
  func.func @transform_1(%arg0: i32) -> (i32, i32) {
    %c0_i32 = arith.constant 0 : i32
    %c0_i32_0 = arith.constant 0 : i32
    %c0_i32_1 = arith.constant 0 : i32
    return %c0_i32, %c0_i32_0 : i32, i32
  }
  func.func @transform_2(%arg0: i32) -> (i32, i32, i32) {
    %c0_i32 = arith.constant 0 : i32
    %c0_i32_0 = arith.constant 0 : i32
    %c0_i32_1 = arith.constant 0 : i32
    return %arg0, %c0_i32, %c0_i32_0 : i32, i32, i32
  }
}

</mosaic_0001>

<bundles_post_ra>
// kernel: decoder_block.1
= control target key start
LH: loop header
LB: loop body
LE: loop exit
PB: predicated region body
PF: predicated region fallthrough
CT: control target
= control target key end

     0   :  { %7 = vsyncpa [#allocation4], 0  ;;  %s1247_s0 = inlined_call_operand.hbm [shape: f32[2,4,256], index: 0, kind: input, shape index: {}]   ;;  %s1248_s1 = inlined_call_operand.hbm [shape: f32[32,72], index: 1, kind: input, shape index: {}]   ;;  %s1249_s2 = inlined_call_operand.hbm [shape: f32[2,32,256], index: 2, kind: output, shape index: {}]  }
   0x1   :  { %9 = vsyncpa [#allocation4 + $0x1], 0 }
   0x2   :  { %10 = vsyncpa [#allocation7], 0 }
   0x3   :  { %11 = vsyncpa [#allocation5], 0 }
   0x4   :  { %13 = vsyncpa [#allocation5 + $0x1], 0  ;;  %s920_s9 = smov 0   ;;  %s922_s10 = smov 0  }
   0x5   :  { %s924_s11 = smov 0   ;;  %s926_s12 = smov 0  }
   0x6 LB: > { %s941_s13 = sadd.s32 4294967295, %s887_s12   ;;  %s636_s14 = sadd.s32 4294967294, %s887_s12   ;;  %s887_s12 = sphi %s926_s12, %s1281_s12   ;;  %s883_s11 = sphi %s924_s11, %s1280_s11   ;;  %s879_s10 = sphi %s922_s10, %s1279_s10   ;;  %s875_s9 = sphi %s920_s9, %s1278_s9  }
   0x7   : > { %p39_p0 = scmp.ne.s32.totalorder %s879_s10, %s875_s9  ;;  %p1250_p1 = scmp.eq.s32.totalorder %s941_s13, 0 }
   0x8   : > { %p90_p3 = scmp.eq.s32.totalorder %s636_s14, 1  ;;  %p637_p5 = scmp.ge.s32.totalorder %s887_s12, 1 }
   0x9   : > { %p950_p4 = por %p1250_p1, %p39_p0  ;;  %p97_p7 = scmp.lt.s32.totalorder %s887_s12, 3 }
   0xa   : > { %p955_p6 = por %p90_p3, %p39_p0  ;;  %s889_s18 = smov [#allocation6]  }
   0xb   : > { %s1253_s15 = scalar_select %p950_p4, 1, 0 }
   0xc   : > { %s1254_s16 = scalar_select %p955_p6, 1, 0 }
   0xd   : > { %p960_p8 = pnand %p637_p5, %p97_p7  ;;  %s109_s19 = sshll.u32 %s889_s18, 4  ;;  %s964_s19 = int_to_ptr.vmem [resolvable:$true] %s109_s19 }
   0xe   : > { %s976_s21 = sadd.s32 1, %s887_s12   ;;  %s26_s22 = sadd.s32 1, %s883_s11 }
   0xf   : > { %s1255_s17 = scalar_select %p960_p8, 1, 0 }
  0x10   : > { %p692_p9 = pneg %p960_p8  ;;  %s23_s23 = ssub.s32 %s887_s12, %s976_s21 }
  0x11   : > { %s759_s26 = scalar_lea.hbm %s1248_s1, 512 }
  0x12   : > { %p971_p11 = pnand %p692_p9, %p1250_p1  ;;  %p760_p12 = scmp.ne.s32.totalorder %s1248_s1, %s759_s26 }
  0x13   : > { %p766_p5 = scmp.lt.u32.totalorder %s759_s26, %s1248_s1 }
  0x14   : > { %p761_p13 = pneg %p971_p11 }
  0x16   : > { %p762_p0 = pnand %p761_p13, %p760_p12 }
  0x18   : > { %p763_p3 = pneg %p762_p0 }
  0x1a   : > { %p768_p7 = pnand %p766_p5, %p763_p3 }
  0x1c   : > { %771 = shalt.err (!%p768_p7)
}
  0x1d   : > { %s772_s3 = scalar_lea.vmem %s964_s19, 512  ;;  %p780_p2 = scmp.lt.s32.totalorder %s964_s19, %s964_s19 }
  0x1e   : > { %p773_p9 = scmp.ne.s32.totalorder %s964_s19, %s772_s3  ;;  %p781_p6 = scmp.lt.s32.totalorder %s772_s3, %s772_s3 }
  0x20   : > { %p775_p10 = pnand %p773_p9, %p761_p13  ;;  %p782_p4 = por %p781_p6, %p780_p2 }
  0x22   : > { %p776_p1 = pneg %p775_p10 }
  0x24   : > { %p783_p8 = pnand %p782_p4, %p776_p1 }
  0x26   : > { %786 = shalt.err (!%p783_p8)
}
  0x27   : > { %s890_s4 = smov 128   ;;  %s891_s5 = smov 8  }
  0x28   : > { %695 = dma.hbm_to_vmem [thread:$0]  (!%p971_p11), %s1248_s1, 512, %s964_s19, [#allocation7], %s890_s4, %s890_s4, %s891_s5  }
  0x29   : > { %p24_p2 = scmp.eq.s32.totalorder %s23_s23, 0  ;;  %p33_p1 = scmp.ne.s32.totalorder %s883_s11, %s879_s10 }
  0x2a   : > { %p34_p4 = scmp.eq.s32.totalorder %s887_s12, 0  ;;  %p705_p6 = scmp.lt.s32.totalorder %s887_s12, 2 }
  0x2b   : > { %s1007_s8 = scalar_select %p24_p2, %s883_s11, %s26_s22  }
  0x2c   : > { %p35_p8 = por %p34_p4, %p33_p1  ;;  %p1257_p10 = scmp.eq.s32.totalorder %s941_s13, 1 }
  0x2d   : > { %s123_s18 = sand.u32 1, %s883_s11   ;;  %s656_s24 = sshll.u32 %s887_s12, 7 }
  0x2e   : > { %p1011_p12 = por %p1257_p10, %p33_p1  ;;  %s640_s25 = sshll.u32 %s123_s18, 3 }
  0x2f   : > { %s1020_s27 = scalar_lea.hbm %s1247_s0, %s656_s24  ;;  %s127_s19 = scalar_lea.vmem [#allocation3], %s640_s25 }
  0x30   : > { %s135_s22 = sshll.u32 %s127_s19, 4  ;;  %p1022_p11 = pnand %p705_p6, %p35_p8  ;;  %s1026_s22 = int_to_ptr.vmem [resolvable:$true] %s135_s22 }
  0x31   : > { %s124_s28 = scalar_lea.sflag [#allocation4], %s123_s18  ;;  %s787_s29 = scalar_lea.hbm %s1020_s27, 128 }
  0x32   : > { %p788_p13 = scmp.ne.s32.totalorder %s1020_s27, %s787_s29  ;;  %p789_p0 = pneg %p1022_p11 }
  0x33   : > { %s792_s4 = scalar_lea.hbm %s1247_s0, 256  ;;  %p793_p7 = scmp.lt.u32.totalorder %s1020_s27, %s1247_s0 }
  0x34   : > { %p790_p3 = pnand %p789_p0, %p788_p13  ;;  %p794_p9 = scmp.lt.u32.totalorder %s792_s4, %s787_s29 }
  0x35   : > { %p796_p1 = scmp.lt.u32.totalorder %s787_s29, %s1020_s27 }
  0x36   : > { %p791_p5 = pneg %p790_p3  ;;  %p795_p2 = por %p794_p9, %p793_p7 }
  0x38   : > { %p797_p4 = por %p796_p1, %p795_p2 }
  0x3a   : > { %p798_p6 = pnand %p797_p4, %p791_p5 }
  0x3c   : > { %801 = shalt.err (!%p798_p6)
}
  0x3d   : > { %s802_s7 = scalar_lea.vmem %s1026_s22, 128  ;;  %s892_s18 = smov [#allocation3]  }
  0x3e   : > { %p803_p8 = scmp.ne.s32.totalorder %s1026_s22, %s802_s7  ;;  %s807_s24 = sshll.u32 %s892_s18, 4  ;;  %s808_s24 = int_to_ptr.vmem [resolvable:$false] %s807_s24 }
  0x3f   : > { %s809_s25 = scalar_lea.vmem %s808_s24, 256  ;;  %p810_p3 = scmp.lt.s32.totalorder %s1026_s22, %s808_s24 }
  0x40   : > { %p805_p10 = pnand %p803_p8, %p789_p0  ;;  %p811_p7 = scmp.lt.s32.totalorder %s809_s25, %s802_s7 }
  0x42   : > { %p806_p13 = pneg %p805_p10  ;;  %p812_p9 = por %p811_p7, %p810_p3 }
  0x44   : > { %p813_p2 = pnand %p812_p9, %p806_p13 }
  0x46   : > { %816 = shalt.err (!%p813_p2)
}
  0x47   : > { %699 = dma.hbm_to_vmem [thread:$0]  (!%p1022_p11), %s1020_s27, 128, %s1026_s22, %s124_s28  }
  0x48   : > { %p1260_p5 = scmp.ne.s32.totalorder %s1255_s17, 0 }
  0x49   : > { %s1056_s20 = sand.u32 (!%p1260_p5), 1, %s879_s10   ;;  %p1261_p0 = scmp.ne.s32.totalorder (!%p1260_p5), %s1253_s15, 0 }
  0x4a   : > { %144 = sbr.rel (%p1260_p5) target bundleno = 782 (0x30e), region = 28  ;;  %s644_s26 = sshll.u32 (!%p1260_p5), %s1056_s20, 3 }
  0x4b   : > { %s147_s19 = scalar_lea.sflag (!%p1260_p5), [#allocation4], %s1056_s20  ;;  %s150_s29 = scalar_lea.vmem (!%p1260_p5), [#allocation3], %s644_s26 }
  0x51   : > { %862 = dma.done.wait (%p1261_p0), %s147_s19, 128  }
  0x52   : > { %864 = vsyncadd (%p1261_p0), %s147_s19, 4294967168  ;;  %p1262_p1 = scmp.eq.s32.totalorder %s941_s13, 0 }
  0x54   : > { %866 = dma.done.wait (%p1262_p1), [#allocation7], 512   ;;  %p1263_p11 = pmov %p1262_p1 }
  0x55   : > { %v893_v0 = vmov 0.0   ;;  %v175_v1 = vld [vmem:[%s150_s29] sm:$0xff]  ;;  %s894_s15 = smov 16   ;;  %s895_s17 = smov 17   ;;  %v176_v3 = vlaneseq }
  0x56   : > { %868 = vsyncadd (%p1263_p11), [#allocation7], 4294966784  ;;  %210 = vst [vmem:[#allocation2 + $0x8] sm:$0xf0] %v893_v0  ;;  %439 = vmatprep.mubr.f32.mxu0 %v893_v0  ;;  %451 = vmatprep.mubr.f32.mxu1 %v893_v0  ;;  %v190_v2 = vcombine.high %v175_v1, %v175_v1  ;;  %s896_s27 = smov 15   ;;  %s897_s22 = smov 1  }
  0x57   : > { %227 = vst [vmem:[#allocation2 + $0x18] sm:$0xf0] %v893_v0  ;;  %209 = vst [vmem:[#allocation2] sm:$0xf0] %v893_v0  ;;  %211 = vrot.lane.b32.xlu1 %v175_v1, %s894_s15  ;;  %192 = vrot.lane.b32.xlu0 %v175_v1, %s895_s17  ;;  %s898_s23 = smov 127   ;;  %s899_s28 = smov 113  }
  0x58   : > { %226 = vst [vmem:[#allocation2 + $0x10] sm:$0xf0] %v893_v0  ;;  %245 = vst [vmem:[#allocation2 + $0x20] sm:$0xf0] %v893_v0  ;;  %s900_s30 = smov 112   ;;  %s901_s3 = smov 111  }
  0x59   : > { %246 = vst [vmem:[#allocation2 + $0x28] sm:$0xf0] %v893_v0  ;;  %262 = vst [vmem:[#allocation2 + $0x30] sm:$0xf0] %v893_v0  ;;  %v1090_v4 = vand.u32 127, %v176_v3  ;;  %s646_s4 = sshll.u32 %s1056_s20, 6 }
  0x5a   : > { %263 = vst [vmem:[#allocation2 + $0x38] sm:$0xf0] %v893_v0  ;;  %266 = vst [vmem:[#allocation2 + $0x40] sm:$0xf0] %v893_v0  ;;  %s657_s5 = sshll.u32 %s941_s13, 10  ;;  %s174_s6 = scalar_lea.vmem [#allocation8], %s646_s4 }
  0x5b   : > { %267 = vst [vmem:[#allocation2 + $0x48] sm:$0xf0] %v893_v0  ;;  %283 = vst [vmem:[#allocation2 + $0x50] sm:$0xf0] %v893_v0  ;;  %228 = vrot.lane.b32.xlu0 %v175_v1, %s896_s27  ;;  %213 = vrot.lane.b32.xlu1 %v190_v2, %s894_s15  ;;  %v1093_v5 = vadd.s32 128, %v1090_v4  ;;  %v179_v6 = vand.u32 15, %v1090_v4  ;;  %s1200_s25 = scalar_lea.hbm %s1249_s2, %s657_s5 }
  0x5c   : > { %284 = vst [vmem:[#allocation2 + $0x58] sm:$0xf0] %v893_v0  ;;  %302 = vst [vmem:[#allocation2 + $0x60] sm:$0xf0] %v893_v0  ;;  %vm215_vm0 = vcmp.lt.s32.totalorder %v1090_v4, 16  ;;  %vm181_vm1 = vcmp.ge.s32.totalorder %v1090_v4, 16 }
  0x5d   : > { %303 = vst [vmem:[#allocation2 + $0x68] sm:$0xf0] %v893_v0  ;;  %319 = vst [vmem:[#allocation2 + $0x70] sm:$0xf0] %v893_v0  ;;  %v180_v9 = vand.u32 15, %v1093_v5  ;;  %vm1099_vm2 = vcmp.le.s32.totalorder %v179_v6, 14 }
  0x5e   : > { %320 = vst [vmem:[#allocation2 + $0x78] sm:$0xf0] %v893_v0  ;;  %338 = vst [vmem:[#allocation2 + $0x80] sm:$0xf0] %v893_v0  ;;  %vm1103_vm3 = vcmp.ge.s32.totalorder %v179_v6, 1  ;;  %vm232_vm4 = vcmp.lt.s32.totalorder %v1090_v4, 15 }
  0x5f   : > { %339 = vst [vmem:[#allocation2 + $0x88] sm:$0xf0] %v893_v0  ;;  %264 = vst [vmem:[#allocation2 + $0x40] sm:$0xf] %v175_v1  ;;  %230 = vrot.lane.b32.xlu1 %v190_v2, %s896_s27  ;;  %194 = vrot.lane.b32.xlu0 %v190_v2, %s895_s17  ;;  %vm196_vm6 = vcmp.lt.s32.totalorder %v1090_v4, 17  ;;  %vm1119_vm7 = vcmp.le.s32.totalorder %v180_v9, 14 }
  0x60   : > { %265 = vst [vmem:[#allocation2 + $0x48] sm:$0xf] %v190_v2  ;;  %vm1114_vm5 = vmand %vm181_vm1, %vm1099_vm2  ;;  %vm1123_vm8 = vcmp.ge.s32.totalorder %v180_v9, 1  ;;  %vm251_vm10 = vcmp.lt.s32.totalorder %v1090_v4, 1  ;;  %vm272_vm11 = vcmp.lt.s32.totalorder %v1090_v4, 127  ;;  %vm184_vm12 = vcmp.lt.s32.totalorder %v1093_v5, 240 }
  0x61   : > { %vm199_vm9 = vmand %vm181_vm1, %vm1103_vm3  ;;  %vm289_vm13 = vcmp.lt.s32.totalorder %v1090_v4, 113  ;;  %vm308_vm15 = vcmp.lt.s32.totalorder %v1090_v4, 112  ;;  %s553_s7 = sshll.u32 %s174_s6, 4  ;;  %s540_s13 = scalar_lea.sflag [#allocation5], %s1056_s20  ;;  %s1202_s7 = int_to_ptr.vmem [resolvable:$true] %s553_s7 }
  0x62   : > { %vm1157_vm14 = vmand %vm184_vm12, %vm1123_vm8  ;;  %s817_s26 = scalar_lea.vmem %s1202_s7, 1024  ;;  %s903_s19 = smov [#allocation8]  }
  0x63   : > { %249 = vrot.lane.b32.xlu1 %v190_v2, %s897_s22  ;;  %247 = vrot.lane.b32.xlu0 %v175_v1, %s897_s22  ;;  %p818_p4 = scmp.ne.s32.totalorder %s1202_s7, %s817_s26  ;;  %s821_s29 = sshll.u32 %s903_s19, 4  ;;  %s822_s29 = int_to_ptr.vmem [resolvable:$false] %s821_s29 }
  0x64   : > { %s823_s17 = scalar_lea.vmem %s822_s29, 2048  ;;  %p824_p10 = scmp.lt.s32.totalorder %s1202_s7, %s822_s29 }
  0x65   : > { %p819_p6 = pnand %p818_p4, %p1011_p12  ;;  %p825_p13 = scmp.lt.s32.totalorder %s823_s17, %s817_s26 }
  0x67   : > { %270 = vrot.lane.b32.xlu1 %v190_v2, %s898_s23  ;;  %268 = vrot.lane.b32.xlu0 %v175_v1, %s898_s23  ;;  %v353_v63 = vld [vmem:[#allocation2 + $0x48] sm:$0xff]  ;;  %p820_p8 = pneg %p819_p6  ;;  %p826_p3 = por %p825_p13, %p824_p10 }
  0x69   : > { %p827_p7 = pnand %p826_p3, %p820_p8 }
  0x6b   : > { %287 = vrot.lane.b32.xlu1 %v190_v2, %s899_s28  ;;  %285 = vrot.lane.b32.xlu0 %v175_v1, %s899_s28 }
  0x6f   : > { %306 = vrot.lane.b32.xlu1 %v190_v2, %s900_s30  ;;  %304 = vrot.lane.b32.xlu0 %v175_v1, %s900_s30 }
  0x73   : > { %323 = vrot.lane.b32.xlu1 %v190_v2, %s901_s3  ;;  %321 = vrot.lane.b32.xlu0 %v175_v1, %s901_s3  ;;  %v352_v1 = vld [vmem:[#allocation2 + $0x40] sm:$0xff] }
  0xc9   : > { %v212_v7 = vpop.permute.xlu1 %211  ;;  %v193_v8 = vpop.permute.xlu0 %192 }
  0xcd   : > { %v229_v11 = vpop.permute.xlu0 %228  ;;  %v214_v12 = vpop.permute.xlu1 %213 }
  0xce   : > { %v216_v14 = vsel %vm215_vm0, %v212_v7, %v214_v12  ;;  %v217_v15 = vsel %vm215_vm0, %v214_v12, %v212_v7  ;;  %vm325_vm0 = vcmp.lt.s32.totalorder %v1090_v4, 111 }
  0xcf   : > { %v222_v16 = vsel %vm181_vm1, %v217_v15, 0.0  ;;  %225 = vst [vmem:[#allocation2 + $0x18] sm:$0xf] %v216_v14  ;;  %vm329_vm1 = vmand %vm184_vm12, %vm1119_vm7 }
  0xd0   : > { %224 = vst [vmem:[#allocation2 + $0x10] sm:$0xf] %v222_v16 }
  0xd1   : > { %v231_v20 = vpop.permute.xlu1 %230  ;;  %v195_v21 = vpop.permute.xlu0 %194 }
  0xd2   : > { %v233_v22 = vsel %vm232_vm4, %v229_v11, %v231_v20  ;;  %v234_v23 = vsel %vm232_vm4, %v231_v20, %v229_v11  ;;  %v197_v24 = vsel %vm196_vm6, %v193_v8, %v195_v21  ;;  %v198_v25 = vsel %vm196_vm6, %v195_v21, %v193_v8 }
  0xd3   : > { %v241_v26 = vsel %vm1114_vm5, %v234_v23, 0.0  ;;  %v242_v27 = vsel %vm1119_vm7, %v233_v22, 0.0  ;;  %v205_v28 = vsel %vm199_vm9, %v198_v25, 0.0  ;;  %v206_v29 = vsel %vm1123_vm8, %v197_v24, 0.0  ;;  %v340_v23 = vld [vmem:[#allocation6] sm:$0xff]  ;;  %v342_v24 = vld [vmem:[#allocation6 + $0x10] sm:$0xff] }
  0xd4   : > { %243 = vst [vmem:[#allocation2 + $0x20] sm:$0xf] %v241_v26  ;;  %244 = vst [vmem:[#allocation2 + $0x28] sm:$0xf] %v242_v27  ;;  %v341_v25 = vld [vmem:[#allocation6 + $0x8] sm:$0xff]  ;;  %v343_v26 = vld [vmem:[#allocation6 + $0x18] sm:$0xff] }
  0xd5   : > { %207 = vst [vmem:[#allocation2] sm:$0xf] %v205_v28  ;;  %208 = vst [vmem:[#allocation2 + $0x8] sm:$0xf] %v206_v29  ;;  %v250_v30 = vpop.permute.xlu1 %249  ;;  %v248_v31 = vpop.permute.xlu0 %247 }
  0xd6   : > { %v252_v32 = vsel %vm251_vm10, %v248_v31, %v250_v30  ;;  %v253_v33 = vsel %vm251_vm10, %v250_v30, %v248_v31  ;;  %v347_v40 = vld [vmem:[#allocation2 + $0x18] sm:$0xff] }
  0xd7   : > { %v258_v34 = vsel %vm1103_vm3, %v253_v33, 0.0  ;;  %v259_v35 = vsel %vm1123_vm8, %v252_v32, 0.0  ;;  %v346_v45 = vld [vmem:[#allocation2 + $0x10] sm:$0xff] }
  0xd8   : > { %260 = vst [vmem:[#allocation2 + $0x30] sm:$0xf] %v258_v34  ;;  %261 = vst [vmem:[#allocation2 + $0x38] sm:$0xf] %v259_v35 }
  0xd9   : > { %v271_v36 = vpop.permute.xlu1 %270  ;;  %v269_v37 = vpop.permute.xlu0 %268 }
  0xda   : > { %v273_v38 = vsel %vm272_vm11, %v269_v37, %v271_v36  ;;  %v274_v39 = vsel %vm272_vm11, %v271_v36, %v269_v37 }
  0xdb   : > { %v279_v41 = vsel %vm1099_vm2, %v273_v38, 0.0  ;;  %v280_v42 = vsel %vm1119_vm7, %v274_v39, 0.0  ;;  %v349_v53 = vld [vmem:[#allocation2 + $0x28] sm:$0xff]  ;;  %v348_v57 = vld [vmem:[#allocation2 + $0x20] sm:$0xff] }
  0xdc   : > { %v345_v43 = vld [vmem:[#allocation2 + $0x8] sm:$0xff]  ;;  %v344_v44 = vld [vmem:[#allocation2] sm:$0xff]  ;;  %281 = vst [vmem:[#allocation2 + $0x50] sm:$0xf] %v279_v41  ;;  %282 = vst [vmem:[#allocation2 + $0x58] sm:$0xf] %v280_v42 }
  0xdd   : > { %v658_v47 = vpack.c.bf16 %v347_v40, %v345_v43  ;;  %v660_v48 = vpack.c.bf16 %v346_v45, %v344_v44  ;;  %v288_v49 = vpop.permute.xlu1 %287  ;;  %v286_v50 = vpop.permute.xlu0 %285 }
  0xde   : > { %v290_v51 = vsel %vm289_vm13, %v286_v50, %v288_v49  ;;  %v291_v52 = vsel %vm289_vm13, %v288_v49, %v286_v50 }
  0xdf   : > { %659 = vmatprep.subr.bf16.mxu0 %v658_v47  ;;  %674 = vmatprep.subr.bf16.mxu1 %v658_v47  ;;  %v298_v54 = vsel %vm1103_vm3, %v290_v51, 0.0  ;;  %v299_v55 = vsel %vm1157_vm14, %v291_v52, 0.0  ;;  %v351_v56 = vld [vmem:[#allocation2 + $0x38] sm:$0xff]  ;;  %v350_v58 = vld [vmem:[#allocation2 + $0x30] sm:$0xff] }
  0xe0   : > { %661 = vmatpush1.bf16.msra.mxu0 %v660_v48  ;;  %679 = vmatpush1.bf16.msra.mxu1 %v660_v48  ;;  %300 = vst [vmem:[#allocation2 + $0x60] sm:$0xf] %v298_v54  ;;  %301 = vst [vmem:[#allocation2 + $0x68] sm:$0xf] %v299_v55  ;;  %v662_v59 = vpack.c.bf16 %v351_v56, %v349_v53  ;;  %v664_v60 = vpack.c.bf16 %v350_v58, %v348_v57  ;;  %v902_v56 = vmov 0  }
  0xe1   : > { %v307_v61 = vpop.permute.xlu1 %306  ;;  %v305_v62 = vpop.permute.xlu0 %304  ;;  %754 = vset.pattern.permute.xlu0 %v902_v56  ;;  %755 = vset.pattern.permute.xlu1 %v902_v56 }
  0xe2   : > { %v309_v2 = vsel %vm308_vm15, %v305_v62, %v307_v61  ;;  %v310_v3 = vsel %vm308_vm15, %v307_v61, %v305_v62  ;;  %663 = vmatprep.subr.bf16.mxu0 %v662_v59  ;;  %675 = vmatprep.subr.bf16.mxu1 %v662_v59 }
  0xe3   : > { %v316_v6 = vsel %vm184_vm12, %v310_v3, 0.0  ;;  %317 = vst [vmem:[#allocation2 + $0x70] sm:$0xf] %v309_v2  ;;  %v355_v7 = vld [vmem:[#allocation2 + $0x58] sm:$0xff]  ;;  %v354_v8 = vld [vmem:[#allocation2 + $0x50] sm:$0xff] }
  0xe4   : > { %665 = vmatpush1.bf16.msra.mxu0 %v664_v60  ;;  %680 = vmatpush1.bf16.msra.mxu1 %v664_v60  ;;  %318 = vst [vmem:[#allocation2 + $0x78] sm:$0xf] %v316_v6  ;;  %v666_v9 = vpack.c.bf16 %v355_v7, %v353_v63  ;;  %v668_v11 = vpack.c.bf16 %v354_v8, %v352_v1 }
  0xe5   : > { %v324_v12 = vpop.permute.xlu1 %323  ;;  %v322_v13 = vpop.permute.xlu0 %321 }
  0xe6   : > { %667 = vmatprep.subr.bf16.mxu0 %v666_v9  ;;  %676 = vmatprep.subr.bf16.mxu1 %v666_v9  ;;  %v326_v14 = vsel %vm325_vm0, %v322_v13, %v324_v12  ;;  %v327_v15 = vsel %vm325_vm0, %v324_v12, %v322_v13 }
  0xe7   : > { %v334_v16 = vsel %vm1099_vm2, %v326_v14, 0.0  ;;  %v335_v17 = vsel %vm329_vm1, %v327_v15, 0.0  ;;  %v357_v18 = vld [vmem:[#allocation2 + $0x68] sm:$0xff]  ;;  %v356_v20 = vld [vmem:[#allocation2 + $0x60] sm:$0xff]  ;;  %vm362_vm2 = vcmask 588800  }
  0xe8   : > { %669 = vmatpush1.bf16.msra.mxu0 %v668_v11  ;;  %681 = vmatpush1.bf16.msra.mxu1 %v668_v11  ;;  %336 = vst [vmem:[#allocation2 + $0x80] sm:$0xf] %v334_v16  ;;  %337 = vst [vmem:[#allocation2 + $0x88] sm:$0xf] %v335_v17 }
  0xea   : > { %v358_v4 = vld [vmem:[#allocation2 + $0x70] sm:$0xff] }
  0xeb   : > { %v359_v19 = vld [vmem:[#allocation2 + $0x78] sm:$0xff]  ;;  %v672_v21 = vpack.c.bf16 %v358_v4, %v356_v20 }
  0xec   : > { %v670_v5 = vpack.c.bf16 %v359_v19, %v357_v18 }
  0xee   : > { %671 = vmatprep.subr.bf16.mxu0 %v670_v5  ;;  %677 = vmatprep.subr.bf16.mxu1 %v670_v5 }
  0xef   : > { %673 = vmatpush1.bf16.msra.mxu0 %v672_v21  ;;  %682 = vmatpush1.bf16.msra.mxu1 %v672_v21  ;;  %v361_v22 = vld [vmem:[#allocation2 + $0x88] sm:$0xff]  ;;  %v360_v10 = vld [vmem:[#allocation2 + $0x80] sm:$0xff] }
  0xf0   : > { %391 = vmatprep.subr.mxu0 %v361_v22  ;;  %678 = vmatprep.subr.mxu1 %v361_v22 }
  0xf3   : > { %392 = vmatpush1.msra.mxu0 %v360_v10  ;;  %683 = vmatpush1.msra.mxu1 %v360_v10 }
  0xf4   : > { %647 = vmatmul.mubr.msk.f32.vlgmr.msra.gmra.mrb[0].mxu0 %vm362_vm2, %v340_v23  ;;  %649 = vmatmul.mubr.msk.f32.vlgmr.msra.gmra.mrb[0].mxu1 %vm362_vm2, %v342_v24 }
  0xf5   : > { %445 = vmatprep.mubr.f32.mxu0 %v893_v0  ;;  %457 = vmatprep.mubr.f32.mxu1 %v893_v0 }
  0xf8   : > { %648 = vmatmul.mubr.msk.f32.gmra.mrb[2].mxu0 %vm362_vm2, %v341_v25  ;;  %650 = vmatmul.mubr.msk.f32.gmra.mrb[2].mxu1 %vm362_vm2, %v343_v26 }
 0x1c7   : > { %v441_v27 = vpop.f32.mrb[0].mxu0  ;;  %v1177_v28 = vpop.f32.mrb[0].mxu1 }
 0x1c8   : > { %v443_v29 = vpop.f32.mrb[1].mxu0  ;;  %v1179_v30 = vpop.f32.mrb[1].mxu1  ;;  %v470_v33 = vmul.f32 %v441_v27, %v441_v27  ;;  %v476_v40 = vmul.f32 %v1177_v28, %v1177_v28 }
 0x1c9   : > { %v471_v38 = vmul.f32 %v443_v29, %v443_v29  ;;  %v477_v44 = vmul.f32 %v1179_v30, %v1179_v30 }
 0x1cb   : > { %v447_v31 = vpop.f32.mrb[2].mxu0  ;;  %v1181_v32 = vpop.f32.mrb[2].mxu1 }
 0x1cc   : > { %v464_v34 = vadd.f32 %v447_v31, %v441_v27  ;;  %v472_v35 = vmul.f32 %v447_v31, %v447_v31  ;;  %v449_v36 = vpop.f32.mrb[3].mxu0  ;;  %v461_v37 = vpop.f32.mrb[3].mxu1  ;;  %v480_v42 = vmul.f32 %v1181_v32, %v1181_v32 }
 0x1cd   : > { %v465_v39 = vadd.f32 %v449_v36, %v443_v29  ;;  %v473_v0 = vmul.f32 %v449_v36, %v449_v36  ;;  %v481_v47 = vmul.f32 %v461_v37, %v461_v37 }
 0x1ce   : > { %v474_v41 = vadd.f32 %v472_v35, %v470_v33  ;;  %v466_v43 = vadd.f32 %v464_v34, %v1177_v28 }
 0x1cf   : > { %v475_v45 = vadd.f32 %v473_v0, %v471_v38  ;;  %v467_v46 = vadd.f32 %v465_v39, %v1179_v30 }
 0x1d0   : > { %v468_v48 = vadd.f32 %v466_v43, %v1181_v32  ;;  %v478_v49 = vadd.f32 %v476_v40, %v474_v41 }
 0x1d1   : > { %v469_v50 = vadd.f32 %v467_v46, %v461_v37  ;;  %v479_v51 = vadd.f32 %v477_v44, %v475_v45 }
 0x1d2   : > { %v482_v52 = vadd.f32 %v480_v42, %v478_v49 }
 0x1d3   : > { %v484_v53 = vadd.f32 %v469_v50, %v468_v48  ;;  %v483_v54 = vadd.f32 %v481_v47, %v479_v51 }
 0x1d5   : > { %485 = vadd.xlane.f32.xlu0 %v484_v53  ;;  %v488_v55 = vadd.f32 %v483_v54, %v482_v52 }
 0x1d7   : > { %489 = vadd.xlane.f32.xlu1 %v488_v55 }
 0x262   : > { %v486_v57 = vpop.xlane.xlu0 %485 }
 0x263   : > { %v487_v58 = vmul.f32 0.0009765625, %v486_v57 }
 0x264   : > { %v490_v59 = vpop.xlane.xlu1 %489 }
 0x265   : > { %v492_v60 = vmul.f32 %v487_v58, %v487_v58  ;;  %v491_v61 = vmul.f32 0.0009765625, %v490_v59  ;;  %499 = vperm.xlu0 %754, %v487_v58  }
 0x267   : > { %v493_v62 = vsub.f32 %v491_v61, %v492_v60 }
 0x269   : > { %v494_v63 = vmax.f32 %v493_v62, 0.0 }
 0x26b   : > { %v495_v1 = vadd.f32 1e-05, %v494_v63 }
 0x26d   : > { %757 = vrsqrt.f32 %v495_v1 }
 0x277   : > { %v758_v2 = vpop.eup %757 }
 0x278   : > { %512 = vperm.xlu1 %755, %v758_v2  }
 0x2e4   : > { %v500_v3 = vpop.permute.xlu0 %499 }
 0x2e5   : > { %v502_v6 = vsub.f32 %v441_v27, %v500_v3  ;;  %v503_v7 = vsub.f32 %v443_v29, %v500_v3  ;;  %v504_v8 = vsub.f32 %v447_v31, %v500_v3  ;;  %v505_v9 = vsub.f32 %v449_v36, %v500_v3 }
 0x2e6   : > { %v506_v11 = vsub.f32 %v1177_v28, %v500_v3  ;;  %v507_v12 = vsub.f32 %v1179_v30, %v500_v3  ;;  %v508_v13 = vsub.f32 %v1181_v32, %v500_v3  ;;  %v509_v14 = vsub.f32 %v461_v37, %v500_v3 }
 0x2f7   : > { %v513_v15 = vpop.permute.xlu1 %512 }
 0x2f8   : > { %v515_v16 = vmul.f32 %v513_v15, %v502_v6  ;;  %v516_v17 = vmul.f32 %v513_v15, %v503_v7  ;;  %v517_v4 = vmul.f32 %v513_v15, %v504_v8  ;;  %v518_v18 = vmul.f32 %v513_v15, %v505_v9 }
 0x2f9   : > { %v519_v19 = vmul.f32 %v513_v15, %v506_v11  ;;  %v520_v5 = vmul.f32 %v513_v15, %v507_v12  ;;  %v521_v20 = vmul.f32 %v513_v15, %v508_v13  ;;  %v522_v21 = vmul.f32 %v513_v15, %v509_v14 }
 0x2fa   : > { %v523_v22 = vmax.f32 %v515_v16, 0.0  ;;  %v524_v10 = vmax.f32 %v516_v17, 0.0  ;;  %v525_v23 = vmax.f32 %v517_v4, 0.0  ;;  %v526_v24 = vmax.f32 %v518_v18, 0.0 }
 0x2fb   : > { %v527_v25 = vmax.f32 %v519_v19, 0.0  ;;  %v528_v26 = vmax.f32 %v520_v5, 0.0  ;;  %v529_v27 = vmax.f32 %v521_v20, 0.0  ;;  %v530_v28 = vmax.f32 %v522_v21, 0.0 }
 0x2fc   : > { %531 = vst [vmem:[%s174_s6] sm:$0xff] %v523_v22  ;;  %532 = vst [vmem:[%s174_s6 + $0x8] sm:$0xff] %v524_v10 }
 0x2fd   : > { %533 = vst [vmem:[%s174_s6 + $0x10] sm:$0xff] %v525_v23  ;;  %534 = vst [vmem:[%s174_s6 + $0x18] sm:$0xff] %v526_v24 }
 0x2fe   : > { %535 = vst [vmem:[%s174_s6 + $0x20] sm:$0xff] %v527_v25  ;;  %536 = vst [vmem:[%s174_s6 + $0x28] sm:$0xff] %v528_v26 }
 0x2ff   : > { %537 = vst [vmem:[%s174_s6 + $0x30] sm:$0xff] %v529_v27  ;;  %538 = vst [vmem:[%s174_s6 + $0x38] sm:$0xff] %v530_v28 }
 0x300   : > { %830 = shalt.err (!%p827_p7)
}
 0x301   : > { %s831_s27 = scalar_lea.hbm %s1200_s25, 1024  ;;  %s835_s28 = scalar_lea.hbm %s1249_s2, 2048 }
 0x302   : > { %p832_p9 = scmp.ne.s32.totalorder %s1200_s25, %s831_s27  ;;  %p836_p0 = scmp.lt.u32.totalorder %s1200_s25, %s1249_s2 }
 0x303   : > { %p837_p1 = scmp.lt.u32.totalorder %s835_s28, %s831_s27  ;;  %p839_p4 = scmp.lt.u32.totalorder %s831_s27, %s1200_s25 }
 0x304   : > { %p833_p2 = pnand %p832_p9, %p1011_p12 }
 0x305   : > { %p838_p11 = por %p837_p1, %p836_p0 }
 0x306   : > { %p834_p5 = pneg %p833_p2 }
 0x307   : > { %p840_p6 = por %p839_p4, %p838_p11 }
 0x309   : > { %p841_p8 = pnand %p840_p6, %p834_p5 }
 0x30b   : > { %844 = shalt.err (!%p841_p8)
}
 0x30c   : > { %s904_s4 = smov 256  }
 0x30d   : > { %690 = dma.vmem_to_hbm [thread:$0]  (%p1011_p12), %s1202_s7, 1024, %s1200_s25, %s540_s13, %s904_s4, %s904_s4, %s894_s15  }
 0x30e PF: > { %s568_s5 = sand.u32 1, %s875_s9   ;;  %p1276_p10 = scmp.ne.s32.totalorder %s1254_s16, 0 }
 0x30f   : > { %p1277_p13 = scmp.ge.s32.totalorder %s887_s12, 2  ;;  %s569_s6 = scalar_lea.sflag [#allocation5], %s568_s5 }
 0x311   : > { %p701_p3 = pnand %p1277_p13, %p1276_p10 }
 0x313   : > { %870 = dma.done.wait (!%p701_p3), %s569_s6, 1024  }
 0x314   : > { %872 = vsyncadd (!%p701_p3), %s569_s6, 4294966272  ;;  %p16_p7 = scmp.ge.s32.totalorder %s976_s21, 4   ;;  %s1278_s9 = smov %s879_s10 }
 0x315   : > { %s1279_s10 = smov %s883_s11  ;;  %s1280_s11 = smov %s1007_s8 }
 0x316   : > { %s1281_s12 = smov %s976_s21  ;;  %18 = sbr.rel (!%p16_p7) target bundleno = 6 (0x6), region = 77 }
 0x31d   :  { %574 = vsyncpa [#allocation4], 1 }
 0x31e   :  { %576 = vsyncpa [#allocation4 + $0x1], 1 }
 0x31f   :  { %577 = vsyncpa [#allocation7], 1 }
 0x320   :  { %578 = vsyncpa [#allocation5], 1 }
 0x321   :  { %580 = vsyncpa [#allocation5 + $0x1], 1 }

</bundles_post_ra>
